<compile_context>
chip_gen: v7x
topology: tpu7x:2x2x1
jax: 0.10.0
libtpu: 0.0.40
codegen_flags: <defaults>
</compile_context>

<pallas_src>
import functools
import math

import jax
import jax.numpy as jnp
from jax.experimental import pallas as pl
from jax.experimental.pallas import tpu as pltpu


NEG_INF = -1e30  # large finite negative: exp(NEG_INF - m) == 0, no inf arithmetic


def _round_up(x, m):
    return ((x + m - 1) // m) * m


# --------------------------------------------------------------------------- #
# Kernel 1: fused QKV projection (single wide matmul, N-tiled)
# --------------------------------------------------------------------------- #
def qkv_proj_kernel(x_ref, w_ref, o_ref):
    o_ref[...] = jnp.dot(x_ref[...], w_ref[...],
                         preferred_element_type=jnp.float32).astype(o_ref.dtype)


# --------------------------------------------------------------------------- #
# Kernel 2: flash attention (causal, online softmax)
# --------------------------------------------------------------------------- #
def flash_attn_kernel(q_ref, k_ref, v_ref, o_ref, m_ref, l_ref, acc_ref, *,
                      block_q, block_kv, scale, seq_len):
    qi = pl.program_id(1)
    ki = pl.program_id(3)
    num_kv = pl.num_programs(3)

    @pl.when(ki == 0)
    def _init():
        m_ref[...] = jnp.full_like(m_ref, NEG_INF)
        l_ref[...] = jnp.zeros_like(l_ref)
        acc_ref[...] = jnp.zeros_like(acc_ref)

    q_start = qi * block_q
    k_start = ki * block_kv

    # kv blocks entirely above the causal diagonal are skipped (their K/V DMAs
    # are also elided by the clamped kv index_map in the wrapper).
    not_skipped = k_start <= q_start + block_q - 1
    # The mask is only needed for blocks touching the diagonal, or for the last
    # kv block when it contains padded key columns.
    needs_mask = k_start + block_kv - 1 > q_start
    if seq_len % block_kv != 0:
        needs_mask = jnp.logical_or(needs_mask, ki == num_kv - 1)

    def scores():
        # Fold the softmax scale into q once per block (bq*hd multiplies)
        # instead of scaling the (bq, bkv) score tile on every kv step.
        q = (q_ref[...] * scale).astype(q_ref.dtype)
        return jax.lax.dot_general(q, k_ref[...], (((1,), (1,)), ((), ())),
                                   preferred_element_type=jnp.float32)

    def flash_update(s):
        m_prev = m_ref[...]
        m_new = jnp.maximum(m_prev, jnp.max(s, axis=-1, keepdims=True))
        alpha = jnp.exp(m_prev - m_new)
        p = jnp.exp(s - m_new)
        l_ref[...] = alpha * l_ref[...] + jnp.sum(p, axis=-1, keepdims=True)
        acc_ref[...] = alpha * acc_ref[...] + jnp.dot(
            p.astype(v_ref.dtype), v_ref[...], preferred_element_type=jnp.float32)
        m_ref[...] = m_new
        # TODO(synk): nn.Dropout on attn_weights omitted (eval-mode semantics).

    @pl.when(jnp.logical_and(not_skipped, jnp.logical_not(needs_mask)))
    def _interior():                      # fully-unmasked block: no iota/where
        flash_update(scores())

    @pl.when(jnp.logical_and(not_skipped, needs_mask))
    def _diagonal():                      # diagonal (or padded) block: mask it
        s = scores()
        row = q_start + jax.lax.broadcasted_iota(jnp.int32, (block_q, block_kv), 0)
        col = k_start + jax.lax.broadcasted_iota(jnp.int32, (block_q, block_kv), 1)
        s = jnp.where(jnp.logical_or(col > row, col >= seq_len), NEG_INF, s)
        flash_update(s)

    @pl.when(ki == num_kv - 1)
    def _finalize():
        inv_l = pl.reciprocal(l_ref[...], approx=True)      # EUP slot, ~free
        o_ref[...] = (acc_ref[...] * inv_l).astype(o_ref.dtype)


# --------------------------------------------------------------------------- #
# Kernel 3: output projection (reduction over heads into resident output block)
# --------------------------------------------------------------------------- #
def out_proj_kernel(ctx_ref, wo_ref, bo_ref, o_ref):
    # The head axis is the innermost 'arbitrary' grid axis and the output block
    # index is constant across it, so o_ref stays VMEM-resident and accumulates
    # the per-head contributions.  Do not reorder the grid / change the
    # dimension_semantics of axis 2 without revisiting this.
    h = pl.program_id(2)

    @pl.when(h == 0)
    def _init():
        o_ref[...] = jnp.broadcast_to(bo_ref[...], o_ref.shape).astype(o_ref.dtype)

    o_ref[...] += jnp.dot(ctx_ref[...], wo_ref[...],
                          preferred_element_type=jnp.float32)


# --------------------------------------------------------------------------- #
# Wrapper
# --------------------------------------------------------------------------- #
def multi_head_attention(x, wq, wk, wv, wo, bo, *, num_heads):
    b, T, d_in = x.shape
    d_out = wq.shape[1]
    assert d_out % num_heads == 0, "d_out must be divisible by num_heads"
    H = num_heads
    hd = d_out // H
    N = 3 * d_out

    # ---- tile sizes: padding-based (all block dims multiples of 8), no gcd ----
    if T <= 128:
        bq = bkv = _round_up(T, 8)
    else:
        bq, bkv = 128, 256          # 128x256 fills the 256-wide MXU on v6e/v7x
    T_pad = _round_up(T, max(bq, bkv))
    tseq = min(256, T_pad)          # row tile for projection / out-proj (divides T_pad)
    tn = 512 if (N > 512 and N % 512 == 0) else N   # bound weight VMEM residency

    # ---- operands: bf16 for the MXU, f32 accumulation inside the kernels ----
    x_p = jnp.zeros((b, T_pad, d_in), jnp.bfloat16).at[:, :T, :].set(
        x.astype(jnp.bfloat16))
    w_qkv = jnp.concatenate([wq, wk, wv], axis=1).astype(jnp.bfloat16)  # (d_in, 3*d_out)
    wo_h = wo.reshape(H, hd, d_out).astype(jnp.bfloat16)                # per-head slabs
    bo2 = bo.reshape(1, d_out).astype(jnp.float32)

    vmem_params = dict(vmem_limit_bytes=32 * 1024 * 1024)

    # ---------------- kernel 1: fused QKV projection ----------------
    qkv = pl.pallas_call(
        qkv_proj_kernel,
        out_shape=jax.ShapeDtypeStruct((b, T_pad, N), jnp.bfloat16),
        grid_spec=pltpu.PrefetchScalarGridSpec(
            num_scalar_prefetch=0,
            grid=(b, T_pad // tseq, N // tn),
            in_specs=[
                pl.BlockSpec((None, tseq, d_in), lambda bi, ti, nj: (bi, ti, 0)),
                pl.BlockSpec((d_in, tn), lambda bi, ti, nj: (0, nj)),
            ],
            out_specs=pl.BlockSpec((None, tseq, tn), lambda bi, ti, nj: (bi, ti, nj)),
        ),
        compiler_params=pltpu.CompilerParams(
            dimension_semantics=("parallel", "parallel", "parallel"), **vmem_params),
    )(x_p, w_qkv)

    # ---------------- layout for attention ----------------
    def kv_block(qi, ki):
        # Clamp to the last causally-needed kv block so fully-masked
        # upper-triangle steps reuse the previous block (DMA elided).
        return jnp.minimum(ki, (qi * bq + bq - 1) // bkv)

    if hd % 128 == 0:
        # Lane-aligned head_dim: slice heads straight out of the projection
        # output -- no transpose, no extra HBM round trip.
        q_in = k_in = v_in = qkv
        q_spec = pl.BlockSpec((None, bq, hd), lambda bi, qi, h, ki: (bi, qi, h))
        k_spec = pl.BlockSpec((None, bkv, hd),
                              lambda bi, qi, h, ki: (bi, kv_block(qi, ki), H + h))
        v_spec = pl.BlockSpec((None, bkv, hd),
                              lambda bi, qi, h, ki: (bi, kv_block(qi, ki), 2 * H + h))
    else:
        # head_dim not lane-aligned: one-off XLA reshape/transpose to head-major.
        q_in = qkv[:, :, 0 * d_out:1 * d_out].reshape(b, T_pad, H, hd).transpose(0, 2, 1, 3)
        k_in = qkv[:, :, 1 * d_out:2 * d_out].reshape(b, T_pad, H, hd).transpose(0, 2, 1, 3)
        v_in = qkv[:, :, 2 * d_out:3 * d_out].reshape(b, T_pad, H, hd).transpose(0, 2, 1, 3)
        q_spec = pl.BlockSpec((None, None, bq, hd), lambda bi, qi, h, ki: (bi, h, qi, 0))
        k_spec = pl.BlockSpec((None, None, bkv, hd),
                              lambda bi, qi, h, ki: (bi, h, kv_block(qi, ki), 0))
        v_spec = pl.BlockSpec((None, None, bkv, hd),
                              lambda bi, qi, h, ki: (bi, h, kv_block(qi, ki), 0))

    scale = 1.0 / math.sqrt(hd)
    attn_kernel = functools.partial(flash_attn_kernel, block_q=bq, block_kv=bkv,
                                    scale=scale, seq_len=T)

    # ---------------- kernel 2: flash attention ----------------
    ctx = pl.pallas_call(
        attn_kernel,
        out_shape=jax.ShapeDtypeStruct((b, H, T_pad, hd), jnp.bfloat16),
        grid_spec=pltpu.PrefetchScalarGridSpec(
            num_scalar_prefetch=0,
            grid=(b, T_pad // bq, H, T_pad // bkv),
            in_specs=[q_spec, k_spec, v_spec],
            out_specs=pl.BlockSpec((None, None, bq, hd),
                                   lambda bi, qi, h, ki: (bi, h, qi, 0)),
            scratch_shapes=[
                pltpu.VMEM((bq, 1), jnp.float32),    # m (running max)
                pltpu.VMEM((bq, 1), jnp.float32),    # l (running denom)
                pltpu.VMEM((bq, hd), jnp.float32),   # acc (running context)
            ],
        ),
        compiler_params=pltpu.CompilerParams(
            dimension_semantics=("parallel", "parallel", "parallel", "arbitrary"),
            **vmem_params),
    )(q_in, k_in, v_in)

    # ---------------- kernel 3: output projection ----------------
    out_p = pl.pallas_call(
        out_proj_kernel,
        out_shape=jax.ShapeDtypeStruct((b, T_pad, d_out), jnp.float32),
        grid_spec=pltpu.PrefetchScalarGridSpec(
            num_scalar_prefetch=0,
            grid=(b, T_pad // tseq, H),
            in_specs=[
                pl.BlockSpec((None, None, tseq, hd), lambda bi, ti, h: (bi, h, ti, 0)),
                pl.BlockSpec((None, hd, d_out), lambda bi, ti, h: (h, 0, 0)),
                pl.BlockSpec((1, d_out), lambda bi, ti, h: (0, 0)),
            ],
            out_specs=pl.BlockSpec((None, tseq, d_out), lambda bi, ti, h: (bi, ti, 0)),
        ),
        compiler_params=pltpu.CompilerParams(
            dimension_semantics=("parallel", "parallel", "arbitrary"), **vmem_params),
    )(ctx, wo_h, bo2)

    return out_p[:, :T, :]


# --------------------------------------------------------------------------- #
# Pure-JAX (f32) reference mirroring the PyTorch forward (dropout = eval mode)
# --------------------------------------------------------------------------- #
def reference_mha(x, wq, wk, wv, wo, bo, *, num_heads):
    b, T, d_in = x.shape
    d_out = wq.shape[1]
    hd = d_out // num_heads
    q = (x @ wq).reshape(b, T, num_heads, hd).transpose(0, 2, 1, 3)
    k = (x @ wk).reshape(b, T, num_heads, hd).transpose(0, 2, 1, 3)
    v = (x @ wv).reshape(b, T, num_heads, hd).transpose(0, 2, 1, 3)
    s = jnp.einsum("bhqd,bhkd->bhqk", q, k)
    mask = jnp.triu(jnp.ones((T, T), dtype=bool), k=1)
    s = jnp.where(mask[None, None], -jnp.inf, s)
    w = jax.nn.softmax(s / (hd ** 0.5), axis=-1)
    ctx = jnp.einsum("bhqk,bhkd->bhqd", w, v).transpose(0, 2, 1, 3).reshape(b, T, d_out)
    return ctx @ wo + bo


if __name__ == "__main__":
    def run_case(batch, seq, d_in, d_out, num_heads):
        key = jax.random.PRNGKey(0)
        kx, kq, kk, kv, ko, kb = jax.random.split(key, 6)
        x = jax.random.normal(kx, (batch, seq, d_in), dtype=jnp.float32)
        # nn.Linear-equivalent parameters stored transposed, i.e. (in, out).
        wq = jax.random.normal(kq, (d_in, d_out), dtype=jnp.float32) * (d_in ** -0.5)
        wk = jax.random.normal(kk, (d_in, d_out), dtype=jnp.float32) * (d_in ** -0.5)
        wv = jax.random.normal(kv, (d_in, d_out), dtype=jnp.float32) * (d_in ** -0.5)
        wo = jax.random.normal(ko, (d_out, d_out), dtype=jnp.float32) * (d_out ** -0.5)
        bo = jax.random.normal(kb, (d_out,), dtype=jnp.float32) * 0.1

        out = jax.block_until_ready(
            multi_head_attention(x, wq, wk, wv, wo, bo, num_heads=num_heads))
        ref = reference_mha(x, wq, wk, wv, wo, bo, num_heads=num_heads)
        assert out.shape == (batch, seq, d_out)
        # bf16 MXU operands (f32 accumulation) + approx reciprocal → relaxed tol.
        assert jnp.allclose(out, ref, atol=5e-2, rtol=5e-2), (
            f"mismatch vs reference, max abs diff = {jnp.max(jnp.abs(out - ref))}")

    # Small shapes consistent with the module's forward (head_dim=8 path).
    run_case(batch=2, seq=8, d_in=16, d_out=32, num_heads=4)
    # Lane-aligned head_dim (128) path + non-multiple-of-8 sequence (padding path).
    run_case(batch=1, seq=12, d_in=32, d_out=256, num_heads=2)

    print("KERNEL_OK")
</pallas_src>

<mosaic_0001>
module attributes {stable_mosaic.version = 11 : i64} {
  func.func @qkv_proj_kernel(%arg0: i32, %arg1: i32, %arg2: i32, %arg3: memref<1x8x16xbf16, #tpu.memory_space<vmem>>, %arg4: memref<16x96xbf16, #tpu.memory_space<vmem>>, %arg5: memref<1x8x96xbf16, #tpu.memory_space<vmem>>) attributes {dimension_semantics = [#tpu.dimension_semantics<parallel>, #tpu.dimension_semantics<parallel>, #tpu.dimension_semantics<parallel>], iteration_bounds = array<i64: 2, 1, 1>, scalar_prefetch = 0 : i64, scratch_operands = 0 : i64, tpu.core_type = #tpu.core_type<tc>, window_params = [{transform_indices = @transform_0, window_bounds = array<i64: 1, 8, 16>}, {transform_indices = @transform_1, window_bounds = array<i64: 16, 96>}, {transform_indices = @transform_2, window_bounds = array<i64: 1, 8, 96>}]} {
    %c0 = arith.constant 0 : index
    %c0_0 = arith.constant 0 : index
    %c0_1 = arith.constant 0 : index
    %0 = vector.load %arg3[%c0, %c0_0, %c0_1] : memref<1x8x16xbf16, #tpu.memory_space<vmem>>, vector<1x8x16xbf16>
    %1 = vector.shape_cast %0 : vector<1x8x16xbf16> to vector<8x16xbf16>
    %c0_2 = arith.constant 0 : index
    %c0_3 = arith.constant 0 : index
    %2 = vector.load %arg4[%c0_2, %c0_3] : memref<16x96xbf16, #tpu.memory_space<vmem>>, vector<16x96xbf16>
    %cst = arith.constant dense<0.000000e+00> : vector<8x96xf32>
    %3 = tpu.matmul %1, %2, %cst {dimension_numbers = #tpu.dot_dimension_numbers<[1], [0], [0], [1], [0, 0, 1, 1], [], []>} : vector<8x16xbf16>, vector<16x96xbf16>, vector<8x96xf32> -> vector<8x96xf32>
    %4 = arith.truncf %3 : vector<8x96xf32> to vector<8x96xbf16>
    %c0_4 = arith.constant 0 : index
    %c0_5 = arith.constant 0 : index
    %c0_6 = arith.constant 0 : index
    %5 = vector.load %arg5[%c0_4, %c0_5, %c0_6] : memref<1x8x96xbf16, #tpu.memory_space<vmem>>, vector<1x8x96xbf16>
    %6 = vector.shape_cast %5 : vector<1x8x96xbf16> to vector<8x96xbf16>
    %7 = vector.shape_cast %4 : vector<8x96xbf16> to vector<1x8x96xbf16>
    tpu.vector_store %arg5[%c0_4, %c0_5, %c0_6], %7 {strides = array<i32>} : memref<1x8x96xbf16, #tpu.memory_space<vmem>>, vector<1x8x96xbf16>,
    return
  }
  func.func @transform_0(%arg0: i32, %arg1: i32, %arg2: i32) -> (i32, i32, i32) {
    %c0_i32 = arith.constant 0 : i32
    %c0_i32_0 = arith.constant 0 : i32
    return %arg0, %arg1, %c0_i32 : i32, i32, i32
  }
  func.func @transform_1(%arg0: i32, %arg1: i32, %arg2: i32) -> (i32, i32) {
    %c0_i32 = arith.constant 0 : i32
    %c0_i32_0 = arith.constant 0 : i32
    return %c0_i32, %arg2 : i32, i32
  }
  func.func @transform_2(%arg0: i32, %arg1: i32, %arg2: i32) -> (i32, i32, i32) {
    %c0_i32 = arith.constant 0 : i32
    return %arg0, %arg1, %arg2 : i32, i32, i32
  }
}

</mosaic_0001>

<bundles_post_ra>
// kernel: tpu_custom_call.1
= control target key start
LH: loop header
LB: loop body
LE: loop exit
PB: predicated region body
PF: predicated region fallthrough
CT: control target
= control target key end

     0   :  { %7 = vsyncpa [#allocation3], 0  ;;  %s861_s0 = inlined_call_operand.hbm [shape: bf16[2,8,16], index: 0, kind: input, shape index: {}]   ;;  %s862_s1 = inlined_call_operand.hbm [shape: bf16[16,96], index: 1, kind: input, shape index: {}]   ;;  %s863_s2 = inlined_call_operand.hbm [shape: bf16[2,8,96], index: 2, kind: output, shape index: {}]  }
   0x1   :  { %9 = vsyncpa [#allocation3 + $0x1], 0 }
   0x2   :  { %10 = vsyncpa [#allocation6], 0 }
   0x3   :  { %11 = vsyncpa [#allocation4], 0 }
   0x4   :  { %13 = vsyncpa [#allocation4 + $0x1], 0  ;;  %s647_s9 = smov 0   ;;  %s649_s10 = smov 0  }
   0x5   :  { %s651_s11 = smov 0   ;;  %s653_s12 = smov 0  }
   0x6   :  { %s655_s13 = smov 0   ;;  %s657_s14 = smov 0  }
   0x7 LB: > { %s376_s15 = sadd.s32 4294967295, %s623_s14   ;;  %s377_s16 = sadd.s32 4294967294, %s623_s14   ;;  %s623_s14 = sphi %s657_s14, %s19_s14   ;;  %s619_s13 = sphi %s655_s13, %s887_s13   ;;  %s615_s12 = sphi %s653_s12, %s886_s12   ;;  %s611_s11 = sphi %s651_s11, %s885_s11   ;;  %s607_s10 = sphi %s649_s10, %s884_s10   ;;  %s603_s9 = sphi %s647_s9, %s883_s9  }
   0x8   : > { %p60_p0 = scmp.ne.s32.totalorder %s607_s10, %s603_s9  ;;  %p681_p1 = scmp.eq.s32.totalorder %s376_s15, 0 }
   0x9   : > { %p685_p2 = scmp.eq.s32.totalorder %s376_s15, 1  ;;  %p120_p3 = scmp.eq.s32.totalorder %s377_s16, 1 }
   0xa   : > { %s868_s17 = scalar_select %p681_p1, 1, 0 }
   0xb   : > { %s869_s18 = scalar_select %p685_p2, 1, 0 }
   0xc   : > { %p691_p4 = por %p681_p1, %p60_p0  ;;  %p378_p5 = scmp.ge.s32.totalorder %s623_s14, 1 }
   0xd   : > { %p696_p6 = por %p120_p3, %p60_p0  ;;  %p127_p7 = scmp.lt.s32.totalorder %s623_s14, 3 }
   0xe   : > { %s870_s19 = scalar_select %p691_p4, 1, 0 }
   0xf   : > { %s871_s20 = scalar_select %p696_p6, 1, 0 }
  0x10   : > { %p701_p8 = pnand %p378_p5, %p127_p7  ;;  %s625_s22 = smov [#allocation5]  }
  0x11   : > { %s141_s23 = sshll.u32 %s625_s22, 4  ;;  %s38_s25 = sadd.s32 1, %s619_s13  ;;  %s142_s23 = int_to_ptr.vmem [resolvable:$true] %s141_s23 }
  0x12   : > { %s872_s21 = scalar_select %p701_p8, 1, 0 }
  0x13   : > { %p409_p9 = pneg %p701_p8  ;;  %s479_s28 = scalar_lea.hbm %s862_s1, 128 }
  0x14   : > { %p480_p12 = scmp.ne.s32.totalorder %s862_s1, %s479_s28  ;;  %p486_p5 = scmp.lt.u32.totalorder %s479_s28, %s862_s1 }
  0x15   : > { %p710_p11 = pnand %p409_p9, %p681_p1 }
  0x17   : > { %p481_p13 = pneg %p710_p11 }
  0x19   : > { %p482_p0 = pnand %p481_p13, %p480_p12 }
  0x1b   : > { %p483_p3 = pneg %p482_p0 }
  0x1d   : > { %p488_p7 = pnand %p486_p5, %p483_p3 }
  0x1f   : > { %491 = shalt.err (!%p488_p7)
}
  0x20   : > { %s492_s5 = scalar_lea.vmem %s142_s23, 128  ;;  %p500_p1 = scmp.lt.s32.totalorder %s142_s23, %s142_s23 }
  0x21   : > { %p493_p9 = scmp.ne.s32.totalorder %s142_s23, %s492_s5  ;;  %p501_p4 = scmp.lt.s32.totalorder %s492_s5, %s492_s5 }
  0x23   : > { %p495_p10 = pnand %p493_p9, %p481_p13  ;;  %p502_p8 = por %p501_p4, %p500_p1 }
  0x25   : > { %p496_p6 = pneg %p495_p10 }
  0x27   : > { %p503_p2 = pnand %p502_p8, %p496_p6 }
  0x29   : > { %506 = shalt.err (!%p503_p2)
}
  0x2a   : > { %s626_s6 = smov 64   ;;  %s627_s7 = smov 4  }
  0x2b   : > { %412 = dma.hbm_to_vmem [thread:$0]  (!%p710_p11), %s862_s1, 128, %s142_s23, [#allocation6], %s626_s6, %s626_s6, %s627_s7  }
  0x2c   : > { %p40_p1 = scmp.ge.s32.totalorder %s38_s25, 2  ;;  %s47_s16 = sadd.s32 1, %s611_s11 }
  0x2d   : > { %p54_p2 = scmp.ne.s32.totalorder %s611_s11, %s607_s10  ;;  %p55_p4 = scmp.eq.s32.totalorder %s623_s14, 0 }
  0x2e   : > { %s889_s25 = smov (%p40_p1, %s38_s25), 0  ;;  %p875_p8 = scmp.ne.s32.totalorder %s869_s18, 0 }
  0x2f   : > { %p737_p6 = por %p55_p4, %p54_p2  ;;  %s42_s24 = ssub.s32 %s619_s13, %s889_s25 }
  0x30   : > { %p743_p10 = por %p875_p8, %p54_p2  ;;  %p422_p12 = scmp.lt.s32.totalorder %s623_s14, 2 }
  0x31   : > { %p45_p11 = scmp.eq.s32.totalorder %s42_s24, 0  ;;  %s155_s23 = sand.u32 1, %s611_s11  }
  0x32   : > { %s381_s27 = sshll.u32 %s155_s23, 2  ;;  %s382_s29 = sshll.u32 %s619_s13, 6 }
  0x33   : > { %s752_s28 = scalar_select %p45_p11, %s611_s11, %s47_s16  }
  0x34   : > { %s758_s4 = scalar_lea.hbm %s861_s0, %s382_s29  ;;  %s159_s18 = scalar_lea.vmem [#allocation2], %s381_s27 }
  0x35   : > { %s167_s5 = sshll.u32 %s159_s18, 4  ;;  %p764_p13 = pnand %p422_p12, %p737_p6  ;;  %s760_s5 = int_to_ptr.vmem [resolvable:$true] %s167_s5 }
  0x36   : > { %s156_s7 = scalar_lea.sflag [#allocation3], %s155_s23  ;;  %s507_s8 = scalar_lea.hbm %s758_s4, 64 }
  0x37   : > { %p508_p0 = scmp.ne.s32.totalorder %s758_s4, %s507_s8  ;;  %p509_p3 = pneg %p764_p13 }
  0x38   : > { %s512_s24 = scalar_lea.hbm %s861_s0, 128  ;;  %p513_p9 = scmp.lt.u32.totalorder %s758_s4, %s861_s0 }
  0x39   : > { %p510_p5 = pnand %p509_p3, %p508_p0  ;;  %p514_p1 = scmp.lt.u32.totalorder %s512_s24, %s507_s8 }
  0x3a   : > { %p516_p4 = scmp.lt.u32.totalorder %s507_s8, %s758_s4 }
  0x3b   : > { %p511_p7 = pneg %p510_p5  ;;  %p515_p2 = por %p514_p1, %p513_p9 }
  0x3d   : > { %p517_p6 = por %p516_p4, %p515_p2 }
  0x3f   : > { %p518_p8 = pnand %p517_p6, %p511_p7 }
  0x41   : > { %521 = shalt.err (!%p518_p8)
}
  0x42   : > { %s522_s23 = scalar_lea.vmem %s760_s5, 64  ;;  %s628_s29 = smov [#allocation2]  }
  0x43   : > { %p523_p12 = scmp.ne.s32.totalorder %s760_s5, %s522_s23  ;;  %s527_s30 = sshll.u32 %s628_s29, 4  ;;  %s528_s30 = int_to_ptr.vmem [resolvable:$false] %s527_s30 }
  0x44   : > { %s529_s3 = scalar_lea.vmem %s528_s30, 128  ;;  %p530_p5 = scmp.lt.s32.totalorder %s760_s5, %s528_s30 }
  0x45   : > { %p525_p11 = pnand %p523_p12, %p509_p3  ;;  %p531_p9 = scmp.lt.s32.totalorder %s529_s3, %s522_s23 }
  0x47   : > { %p526_p0 = pneg %p525_p11  ;;  %p532_p1 = por %p531_p9, %p530_p5 }
  0x49   : > { %p533_p2 = pnand %p532_p1, %p526_p0 }
  0x4b   : > { %536 = shalt.err (!%p533_p2)
}
  0x4c   : > { %416 = dma.hbm_to_vmem [thread:$0]  (!%p764_p13), %s758_s4, 64, %s760_s5, %s156_s7  }
  0x4d   : > { %p878_p7 = scmp.ne.s32.totalorder %s872_s21, 0 }
  0x4e   : > { %s796_s18 = sand.u32 (!%p878_p7), 1, %s607_s10   ;;  %p879_p3 = scmp.ne.s32.totalorder (!%p878_p7), %s870_s19, 0 }
  0x4f   : > { %176 = sbr.rel (%p878_p7) target bundleno = 323 (0x143), region = 28  ;;  %s384_s8 = sshll.u32 (!%p878_p7), %s796_s18, 2 }
  0x50   : > { %s179_s15 = scalar_lea.sflag (!%p878_p7), [#allocation3], %s796_s18  ;;  %s182_s16 = scalar_lea.vmem (!%p878_p7), [#allocation2], %s384_s8 }
  0x56   : > { %590 = dma.done.wait (%p879_p3), %s179_s15, 64  }
  0x57   : > { %592 = vsyncadd (%p879_p3), %s179_s15, 4294967232  ;;  %p880_p4 = scmp.ne.s32.totalorder %s868_s17, 0 }
  0x59   : > { %594 = dma.done.wait (%p880_p4), [#allocation6], 128  }
  0x5a   : > { %596 = vsyncadd (%p880_p4), [#allocation6], 4294967168  ;;  %v629_v0 = vmov 0.0   ;;  %vm630_vm0 = vmmov 0   ;;  %v478_v1 = vld [vmem:[#allocation5] sm:$0xff]   ;;  %vm217_vm1 = vcmask 130048  }
  0x5b   : > { %395 = vmatprep.subr.bf16.mxu0 %v629_v0  ;;  %397 = vmatprep.mubr.msk.bf16.mxu0 %vm630_vm0, %v629_v0  ;;  %v208_v2 = vld [vmem:[%s182_s16] sm:$0xf]  ;;  %s390_s19 = sshll.u32 %s615_s12, 6  ;;  %s206_s21 = scalar_lea.vmem [#allocation7], %s384_s8  ;;  %vm262_vm2 = vcmask 781312  }
  0x5c   : > { %396 = vmatpush3.bf16.msra.mxu0 %v478_v1  ;;  %s280_s4 = sshll.u32 %s206_s21, 4  ;;  %s812_s6 = scalar_lea.hbm %s863_s2, %s390_s19  ;;  %s814_s4 = int_to_ptr.vmem [resolvable:$true] %s280_s4 }
  0x5d   : > { %s265_s12 = scalar_lea.sflag [#allocation4], %s796_s18  ;;  %s537_s7 = scalar_lea.vmem %s814_s4, 64 }
  0x5e   : > { %p538_p13 = scmp.ne.s32.totalorder %s814_s4, %s537_s7  ;;  %s631_s24 = smov [#allocation7]  }
  0x5f   : > { %398 = vmatmul.mubr.msk.bf16.vlgmr.msra.gmra.mrb[0].mxu0 %vm217_vm1, %v208_v2  ;;  %s541_s22 = sshll.u32 %s631_s24, 4  ;;  %s542_s22 = int_to_ptr.vmem [resolvable:$false] %s541_s22 }
  0x60   : > { %p539_p6 = pnand %p538_p13, %p743_p10  ;;  %s543_s27 = scalar_lea.vmem %s542_s22, 128 }
  0x61   : > { %p544_p12 = scmp.lt.s32.totalorder %s814_s4, %s542_s22  ;;  %p545_p11 = scmp.lt.s32.totalorder %s543_s27, %s537_s7 }
  0x62   : > { %p540_p8 = pneg %p539_p6 }
  0x63   : > { %p546_p0 = por %p545_p11, %p544_p12 }
  0x65   : > { %p547_p5 = pnand %p546_p0, %p540_p8 }
 0x132   : > { %v255_v3 = vpop.f32.mrb[0].mxu0 }
 0x133   : > { %v261_v4 = vpack.c.bf16 %v255_v3, %v255_v3  ;;  %v399_v5 = vpop.f32.mrb[1].mxu0 }
 0x134   : > { %v258_v6 = vpop.f32.mrb[2].mxu0 }
 0x135   : > { %v400_v7 = vpop.f32.mrb[3].mxu0  ;;  %263 = vst.msk [vmem:[%s206_s21] sm:$0xf] %vm262_vm2, %v261_v4 }
 0x136   : > { %550 = shalt.err (!%p547_p5)
}
 0x137   : > { %s551_s23 = scalar_lea.hbm %s812_s6, 64  ;;  %s555_s3 = scalar_lea.hbm %s863_s2, 128 }
 0x138   : > { %p552_p9 = scmp.ne.s32.totalorder %s812_s6, %s551_s23  ;;  %p556_p7 = scmp.lt.u32.totalorder %s812_s6, %s863_s2 }
 0x139   : > { %p557_p3 = scmp.lt.u32.totalorder %s555_s3, %s551_s23  ;;  %p559_p13 = scmp.lt.u32.totalorder %s551_s23, %s812_s6 }
 0x13a   : > { %p553_p1 = pnand %p552_p9, %p743_p10 }
 0x13b   : > { %p558_p4 = por %p557_p3, %p556_p7 }
 0x13c   : > { %p554_p2 = pneg %p553_p1 }
 0x13d   : > { %p560_p6 = por %p559_p13, %p558_p4 }
 0x13f   : > { %p561_p8 = pnand %p560_p6, %p554_p2 }
 0x141   : > { %564 = shalt.err (!%p561_p8)
}
 0x142   : > { %407 = dma.vmem_to_hbm [thread:$0]  (%p743_p10), %s814_s4, 64, %s812_s6, %s265_s12  }
 0x143 PF: > { %s292_s15 = sand.u32 1, %s603_s9   ;;  %p881_p12 = scmp.ne.s32.totalorder %s871_s20, 0 }
 0x144   : > { %p882_p11 = scmp.ge.s32.totalorder %s623_s14, 2  ;;  %s293_s16 = scalar_lea.sflag [#allocation4], %s292_s15 }
 0x146   : > { %p418_p0 = pnand %p882_p11, %p881_p12 }
 0x148   : > { %598 = dma.done.wait (!%p418_p0), %s293_s16, 64  }
 0x149   : > { %600 = vsyncadd (!%p418_p0), %s293_s16, 4294967232  ;;  %s19_s14 = sadd.s32 1, %s623_s14   ;;  %s883_s9 = smov %s607_s10 }
 0x14a   : > { %p16_p5 = scmp.ge.s32.totalorder %s19_s14, 4   ;;  %s884_s10 = smov %s611_s11 }
 0x14b   : > { %s885_s11 = smov %s752_s28  ;;  %s886_s12 = smov %s619_s13 }
 0x14c   : > { %s887_s13 = smov %s889_s25  ;;  %18 = sbr.rel (!%p16_p5) target bundleno = 7 (0x7), region = 78 }
 0x153   :  { %298 = vsyncpa [#allocation3], 1 }
 0x154   :  { %300 = vsyncpa [#allocation3 + $0x1], 1 }
 0x155   :  { %301 = vsyncpa [#allocation6], 1 }
 0x156   :  { %302 = vsyncpa [#allocation4], 1 }
 0x157   :  { %304 = vsyncpa [#allocation4 + $0x1], 1 }

</bundles_post_ra>
